<compile_context>
chip_gen: v5e
topology: v5e:2x2
jax: 0.10.0
libtpu: 0.0.40
codegen_flags: <defaults>
</compile_context>

<pallas_src>
import functools

import jax
import jax.numpy as jnp
from jax import lax
from jax.experimental import pallas as pl
from jax.experimental.pallas import tpu as pltpu


# ---------------------------------------------------------------------------
# Primary kernel (small / medium feature maps): one grid step owns TB batches.
# ---------------------------------------------------------------------------
def _channel_attention_kernel(x_ref, w1_ref, w2_ref, o_ref, *, hw):
    # x_ref / o_ref : (TB, C, HW)   w1_ref : (Cr, C)   w2_ref : (C, Cr)
    x = x_ref[...]                                             # native dtype

    # Global pooling over the spatial lane axis; sums accumulated in f32.
    sum_x = jnp.sum(x, axis=-1, dtype=jnp.float32)             # (TB, C)
    max_x = jnp.max(x, axis=-1).astype(jnp.float32)            # (TB, C)
    avg_x = sum_x * (1.0 / float(hw))                          # (TB, C)

    w1 = w1_ref[...].astype(jnp.float32)                       # (Cr, C)
    w2 = w2_ref[...].astype(jnp.float32)                       # (C, Cr)

    def mlp(v):                                                # (TB, C) -> (TB, C)
        h = lax.dot_general(v, w1, (((1,), (1,)), ((), ())),
                            preferred_element_type=jnp.float32)     # (TB, Cr)
        h = jnp.maximum(h, 0.0)                                      # ReLU
        return lax.dot_general(h, w2, (((1,), (1,)), ((), ())),
                               preferred_element_type=jnp.float32)   # (TB, C)

    att = jax.nn.sigmoid(mlp(avg_x) + mlp(max_x))              # (TB, C) f32
    # Final scale + ReLU in the input's native dtype (no full f32 copy of x).
    att = att.astype(x.dtype)
    o_ref[...] = jnp.maximum(att[:, :, None] * x, 0.0).astype(o_ref.dtype)


# ---------------------------------------------------------------------------
# Fallback pass 1 (large feature maps): pooled stats + MLP, HW streamed in chunks.
# ---------------------------------------------------------------------------
def _pool_mlp_kernel(x_ref, w1_ref, w2_ref, att_ref, sum_sc, max_sc, *, hw, thw):
    # x_ref : (1, C, THW)   att_ref : (1, C, 1)   sum_sc/max_sc : (C, 1) f32
    k = pl.program_id(1)

    @pl.when(k == 0)
    def _():
        sum_sc[...] = jnp.zeros_like(sum_sc)
        max_sc[...] = jnp.full_like(max_sc, -jnp.inf)

    xf = x_ref[0].astype(jnp.float32)                          # (C, THW)
    if hw % thw != 0:
        # Only the tail chunk can read past the valid spatial extent.
        lane = lax.broadcasted_iota(jnp.int32, xf.shape, 1) + k * thw
        valid = lane < hw
        sum_sc[...] += jnp.sum(jnp.where(valid, xf, 0.0), axis=-1, keepdims=True)
        max_sc[...] = jnp.maximum(
            max_sc[...],
            jnp.max(jnp.where(valid, xf, -jnp.inf), axis=-1, keepdims=True))
    else:
        sum_sc[...] += jnp.sum(xf, axis=-1, keepdims=True)
        max_sc[...] = jnp.maximum(max_sc[...], jnp.max(xf, axis=-1, keepdims=True))

    @pl.when(k == pl.num_programs(1) - 1)
    def _():
        w1 = w1_ref[...].astype(jnp.float32)                   # (Cr, C)
        w2 = w2_ref[...].astype(jnp.float32)                   # (C, Cr)
        avg_col = sum_sc[...] * (1.0 / float(hw))              # (C, 1)
        max_col = max_sc[...]                                  # (C, 1)

        def mlp_col(v):                                        # (C, 1) -> (C, 1)
            h = lax.dot_general(w1, v, (((1,), (0,)), ((), ())),
                                preferred_element_type=jnp.float32)     # (Cr, 1)
            h = jnp.maximum(h, 0.0)
            return lax.dot_general(w2, h, (((1,), (0,)), ((), ())),
                                   preferred_element_type=jnp.float32)  # (C, 1)

        att = jax.nn.sigmoid(mlp_col(avg_col) + mlp_col(max_col))       # (C, 1)
        att_ref[...] = att[None].astype(att_ref.dtype)                  # (1, C, 1)


# ---------------------------------------------------------------------------
# Fallback pass 2: apply per-channel attention + trailing ReLU, HW in chunks.
# ---------------------------------------------------------------------------
def _apply_att_kernel(att_ref, x_ref, o_ref):
    # att_ref : (1, C, 1)   x_ref / o_ref : (1, C, THW)
    att = att_ref[...].astype(x_ref.dtype)
    o_ref[...] = jnp.maximum(att * x_ref[...], 0.0).astype(o_ref.dtype)


# ---------------------------------------------------------------------------
# Heuristics (generation-aware)
# ---------------------------------------------------------------------------
def _vmem_capacity_bytes():
    try:
        return int(pltpu.get_tpu_info().vmem_capacity_bytes)
    except Exception:
        return 64 << 20        # conservative default (v7x per-TensorCore physical VMEM)


def _num_tensorcores():
    try:
        kind = jax.devices()[0].device_kind.lower()
    except Exception:
        return 1
    # v7x-class (and v4-class) megacore parts expose 2 TensorCores per chip.
    return 2 if ("v7" in kind or "v4" in kind) else 1


def _pick_tb(n, per_elem_bytes, block_budget_bytes, num_tc):
    """Batch-tile size: biggest block under budget; even grid length on megacore chips."""
    tb = max(1, min(n, block_budget_bytes // max(per_elem_bytes, 1)))
    if num_tc >= 2 and n >= 2:
        # Prefer an even number of grid steps so both TensorCores get equal work.
        t = tb
        while t > 1 and (-(-n // t)) % 2 != 0:
            t -= 1
        if (-(-n // t)) % 2 == 0:
            tb = t
    return tb


# ---------------------------------------------------------------------------
# Wrapper
# ---------------------------------------------------------------------------
def channel_attention(x, w1, w2):
    """x: (N, C, H, W); w1 = fc1.weight[:, :, 0, 0] (Cr, C); w2 = fc2.weight[:, :, 0, 0] (C, Cr)."""
    N, C, H, W = x.shape
    Cr = w1.shape[0]
    HW = H * W
    itemsize = jnp.dtype(x.dtype).itemsize
    x2 = x.reshape(N, C, HW)                      # no padding: full-HW lane blocks

    cap = _vmem_capacity_bytes()
    # x-block + out-block, each double-buffered -> ~4x block bytes live in VMEM.
    block_budget = min(cap // 8, 16 << 20)
    weight_bytes = (w1.size + w2.size) * 4
    per_elem = C * HW * itemsize

    if per_elem <= block_budget:
        # ----------------- primary path: tile over batch only -----------------
        tb = _pick_tb(N, per_elem, block_budget, _num_tensorcores())
        grid = (pl.cdiv(N, tb),)
        block_bytes = tb * per_elem
        vmem_needed = 4 * block_bytes + 2 * weight_bytes + (2 << 20)
        vmem_limit = int(max(vmem_needed, 16 << 20))        # never below requirement

        cost = pl.CostEstimate(
            flops=int(4 * N * C * HW + 8 * N * C * Cr),     # pool-sum + att*x + MLP
            transcendentals=int(N * C),                     # sigmoid
            bytes_accessed=int(2 * N * C * HW * itemsize + weight_bytes),
        )

        out = pl.pallas_call(
            functools.partial(_channel_attention_kernel, hw=HW),
            out_shape=jax.ShapeDtypeStruct((N, C, HW), x.dtype),
            grid_spec=pltpu.PrefetchScalarGridSpec(
                num_scalar_prefetch=0,
                grid=grid,
                in_specs=[
                    pl.BlockSpec((tb, C, HW), lambda n: (n, 0, 0)),
                    pl.BlockSpec((Cr, C), lambda n: (0, 0)),
                    pl.BlockSpec((C, Cr), lambda n: (0, 0)),
                ],
                out_specs=pl.BlockSpec((tb, C, HW), lambda n: (n, 0, 0)),
            ),
            compiler_params=pltpu.CompilerParams(
                dimension_semantics=("parallel",),
                vmem_limit_bytes=vmem_limit,
            ),
            cost_estimate=cost,
        )(x2, w1, w2)
        return out.reshape(N, C, H, W)

    # -------- fallback path: one batch element exceeds the block budget --------
    # Pass 1: stream HW chunks, accumulate per-channel sum/max, MLP on last chunk.
    # Pass 2: re-stream x and apply attention + ReLU.
    thw = max(128, (block_budget // max(C * itemsize, 1)) // 128 * 128)
    thw = min(thw, ((HW + 127) // 128) * 128)
    n_chunks = pl.cdiv(HW, thw)
    block_bytes = C * thw * itemsize

    vmem1 = int(max(2 * block_bytes + 2 * weight_bytes + (4 << 20), 16 << 20))
    att = pl.pallas_call(
        functools.partial(_pool_mlp_kernel, hw=HW, thw=thw),
        out_shape=jax.ShapeDtypeStruct((N, C, 1), jnp.float32),
        grid_spec=pltpu.PrefetchScalarGridSpec(
            num_scalar_prefetch=0,
            grid=(N, n_chunks),
            in_specs=[
                pl.BlockSpec((1, C, thw), lambda n, k: (n, 0, k)),
                pl.BlockSpec((Cr, C), lambda n, k: (0, 0)),
                pl.BlockSpec((C, Cr), lambda n, k: (0, 0)),
            ],
            out_specs=pl.BlockSpec((1, C, 1), lambda n, k: (n, 0, 0)),
            scratch_shapes=[pltpu.VMEM((C, 1), jnp.float32),
                            pltpu.VMEM((C, 1), jnp.float32)],
        ),
        compiler_params=pltpu.CompilerParams(
            dimension_semantics=("parallel", "arbitrary"),
            vmem_limit_bytes=vmem1,
        ),
    )(x2, w1, w2)

    vmem2 = int(max(4 * block_bytes + (4 << 20), 16 << 20))
    out = pl.pallas_call(
        _apply_att_kernel,
        out_shape=jax.ShapeDtypeStruct((N, C, HW), x.dtype),
        grid_spec=pltpu.PrefetchScalarGridSpec(
            num_scalar_prefetch=0,
            grid=(N, n_chunks),
            in_specs=[
                pl.BlockSpec((1, C, 1), lambda n, k: (n, 0, 0)),
                pl.BlockSpec((1, C, thw), lambda n, k: (n, 0, k)),
            ],
            out_specs=pl.BlockSpec((1, C, thw), lambda n, k: (n, 0, k)),
        ),
        compiler_params=pltpu.CompilerParams(
            dimension_semantics=("parallel", "parallel"),
            vmem_limit_bytes=vmem2,
        ),
    )(att, x2)
    return out.reshape(N, C, H, W)


def channel_attention_ref(x, w1, w2):
    """Pure-JAX reference mirroring the PyTorch module."""
    avg = jnp.mean(x, axis=(2, 3), keepdims=True)               # (N, C, 1, 1)
    mx = jnp.max(x, axis=(2, 3), keepdims=True)                 # (N, C, 1, 1)

    def mlp(v):
        v = v[:, :, 0, 0]                                        # (N, C)
        h = jnp.maximum(v @ w1.T, 0.0)                           # (N, Cr)
        return (h @ w2.T)[:, :, None, None]                      # (N, C, 1, 1)

    att = jax.nn.sigmoid(mlp(avg) + mlp(mx))
    return jnp.maximum(att * x, 0.0)


if __name__ == "__main__":
    # Module config: in_planes=32, ratio=16 -> hidden = 2
    N, C, H, W = 2, 32, 16, 16
    ratio = 16
    Cr = C // ratio

    key = jax.random.PRNGKey(0)
    kx, k1, k2 = jax.random.split(key, 3)
    x = jax.random.normal(kx, (N, C, H, W), dtype=jnp.float32)
    # Conv2d 1x1 (bias=False) weights -> plain matrices
    w1 = jax.random.normal(k1, (Cr, C), dtype=jnp.float32) * 0.1   # fc1.weight[:, :, 0, 0]
    w2 = jax.random.normal(k2, (C, Cr), dtype=jnp.float32) * 0.1   # fc2.weight[:, :, 0, 0]

    out = channel_attention(x, w1, w2)
    out = jax.block_until_ready(out)

    ref = channel_attention_ref(x, w1, w2)
    assert out.shape == (N, C, H, W)
    assert jnp.allclose(out, ref, atol=1e-5, rtol=1e-5), "mismatch vs reference"

    print("KERNEL_OK")
</pallas_src>

<mosaic_0001>
module attributes {stable_mosaic.version = 11 : i64} {
  func.func @_channel_attention_kernel(%arg0: i32, %arg1: memref<2x32x256xf32, #tpu.memory_space<vmem>>, %arg2: memref<2x32xf32, #tpu.memory_space<vmem>>, %arg3: memref<32x2xf32, #tpu.memory_space<vmem>>, %arg4: memref<2x32x256xf32, #tpu.memory_space<vmem>>) attributes {dimension_semantics = [#tpu.dimension_semantics<parallel>], iteration_bounds = array<i64: 1>, scalar_prefetch = 0 : i64, scratch_operands = 0 : i64, tpu.core_type = #tpu.core_type<tc>, window_params = [{transform_indices = @transform_0, window_bounds = array<i64: 2, 32, 256>}, {pipeline_mode = #tpu.pipeline_mode<synchronous>, transform_indices = @transform_1, window_bounds = array<i64: 2, 32>}, {pipeline_mode = #tpu.pipeline_mode<synchronous>, transform_indices = @transform_2, window_bounds = array<i64: 32, 2>}, {transform_indices = @transform_3, window_bounds = array<i64: 2, 32, 256>}]} {
    %c0 = arith.constant 0 : index
    %c0_0 = arith.constant 0 : index
    %c0_1 = arith.constant 0 : index
    %0 = vector.load %arg1[%c0, %c0_0, %c0_1] : memref<2x32x256xf32, #tpu.memory_space<vmem>>, vector<2x32x256xf32>
    %cst = arith.constant dense<0.000000e+00> : vector<2x32xf32>
    %1 = vector.multi_reduction <add>, %0, %cst [2] : vector<2x32x256xf32> to vector<2x32xf32>
    %cst_2 = arith.constant dense<0xFF800000> : vector<2x32xf32>
    %2 = vector.multi_reduction <maximumf>, %0, %cst_2 [2] : vector<2x32x256xf32> to vector<2x32xf32>
    %cst_3 = arith.constant 3.906250e-03 : f32
    %3 = vector.broadcast %cst_3 : f32 to vector<2x32xf32>
    %4 = arith.mulf %1, %3 : vector<2x32xf32>
    %c0_4 = arith.constant 0 : index
    %c0_5 = arith.constant 0 : index
    %5 = vector.load %arg2[%c0_4, %c0_5] : memref<2x32xf32, #tpu.memory_space<vmem>>, vector<2x32xf32>
    %c0_6 = arith.constant 0 : index
    %c0_7 = arith.constant 0 : index
    %6 = vector.load %arg3[%c0_6, %c0_7] : memref<32x2xf32, #tpu.memory_space<vmem>>, vector<32x2xf32>
    %cst_8 = arith.constant dense<0.000000e+00> : vector<2x2xf32>
    %7 = tpu.matmul %4, %5, %cst_8 {dimension_numbers = #tpu.dot_dimension_numbers<[1], [1], [0], [0], [0, 0, 1, 0], [], []>} : vector<2x32xf32>, vector<2x32xf32>, vector<2x2xf32> -> vector<2x2xf32>
    %cst_9 = arith.constant 0.000000e+00 : f32
    %8 = vector.broadcast %cst_9 : f32 to vector<2x2xf32>
    %9 = arith.maximumf %7, %8 : vector<2x2xf32>
    %cst_10 = arith.constant dense<0.000000e+00> : vector<2x32xf32>
    %10 = tpu.matmul %9, %6, %cst_10 {dimension_numbers = #tpu.dot_dimension_numbers<[1], [1], [0], [0], [0, 0, 1, 0], [], []>} : vector<2x2xf32>, vector<32x2xf32>, vector<2x32xf32> -> vector<2x32xf32>
    %cst_11 = arith.constant dense<0.000000e+00> : vector<2x2xf32>
    %11 = tpu.matmul %2, %5, %cst_11 {dimension_numbers = #tpu.dot_dimension_numbers<[1], [1], [0], [0], [0, 0, 1, 0], [], []>} : vector<2x32xf32>, vector<2x32xf32>, vector<2x2xf32> -> vector<2x2xf32>
    %cst_12 = arith.constant 0.000000e+00 : f32
    %12 = vector.broadcast %cst_12 : f32 to vector<2x2xf32>
    %13 = arith.maximumf %11, %12 : vector<2x2xf32>
    %cst_13 = arith.constant dense<0.000000e+00> : vector<2x32xf32>
    %14 = tpu.matmul %13, %6, %cst_13 {dimension_numbers = #tpu.dot_dimension_numbers<[1], [1], [0], [0], [0, 0, 1, 0], [], []>} : vector<2x2xf32>, vector<32x2xf32>, vector<2x32xf32> -> vector<2x32xf32>
    %15 = arith.addf %10, %14 : vector<2x32xf32>
    %16 = arith.negf %15 : vector<2x32xf32>
    %17 = math.exp %16 : vector<2x32xf32>
    %cst_14 = arith.constant 1.000000e+00 : f32
    %18 = vector.broadcast %cst_14 : f32 to vector<2x32xf32>
    %19 = arith.addf %18, %17 : vector<2x32xf32>
    %20 = arith.divf %18, %19 : vector<2x32xf32>
    %21 = vector.shape_cast %20 : vector<2x32xf32> to vector<2x32x1xf32>
    %22 = vector.broadcast %21 : vector<2x32x1xf32> to vector<2x32x256xf32>
    %23 = arith.mulf %22, %0 : vector<2x32x256xf32>
    %cst_15 = arith.constant 0.000000e+00 : f32
    %24 = vector.broadcast %cst_15 : f32 to vector<2x32x256xf32>
    %25 = arith.maximumf %23, %24 : vector<2x32x256xf32>
    %c0_16 = arith.constant 0 : index
    %c0_17 = arith.constant 0 : index
    %c0_18 = arith.constant 0 : index
    %26 = vector.load %arg4[%c0_16, %c0_17, %c0_18] : memref<2x32x256xf32, #tpu.memory_space<vmem>>, vector<2x32x256xf32>
    tpu.vector_store %arg4[%c0_16, %c0_17, %c0_18], %25 {strides = array<i32>} : memref<2x32x256xf32, #tpu.memory_space<vmem>>, vector<2x32x256xf32>,
    return
  }
  func.func @transform_0(%arg0: i32) -> (i32, i32, i32) {
    %c0_i32 = arith.constant 0 : i32
    %c0_i32_0 = arith.constant 0 : i32
    %c0_i32_1 = arith.constant 0 : i32
    return %arg0, %c0_i32, %c0_i32_0 : i32, i32, i32
  }
  func.func @transform_1(%arg0: i32) -> (i32, i32) {
    %c0_i32 = arith.constant 0 : i32
    %c0_i32_0 = arith.constant 0 : i32
    %c0_i32_1 = arith.constant 0 : i32
    return %c0_i32, %c0_i32_0 : i32, i32
  }
  func.func @transform_2(%arg0: i32) -> (i32, i32) {
    %c0_i32 = arith.constant 0 : i32
    %c0_i32_0 = arith.constant 0 : i32
    %c0_i32_1 = arith.constant 0 : i32
    return %c0_i32, %c0_i32_0 : i32, i32
  }
  func.func @transform_3(%arg0: i32) -> (i32, i32, i32) {
    %c0_i32 = arith.constant 0 : i32
    %c0_i32_0 = arith.constant 0 : i32
    %c0_i32_1 = arith.constant 0 : i32
    return %arg0, %c0_i32, %c0_i32_0 : i32, i32, i32
  }
}

</mosaic_0001>

<bundles_post_ra>
// kernel: tpu_custom_call.1
= control target key start
LH: loop header
LB: loop body
LE: loop exit
PB: predicated region body
PF: predicated region fallthrough
CT: control target
= control target key end

     0   :  { %8 = vsyncpa [#allocation3], 0  ;;  %s661_s0 = inlined_call_operand.hbm [shape: f32[2,32,256], index: 0, kind: input, shape index: {}]   ;;  %s662_s1 = inlined_call_operand.vmem [shape: f32[2,32], index: 1, kind: input, shape index: {}]   ;;  %s663_s2 = inlined_call_operand.vmem [shape: f32[32,2], index: 2, kind: input, shape index: {}]   ;;  %s664_s3 = inlined_call_operand.hbm [shape: f32[2,32,256], index: 3, kind: output, shape index: {}]  }
   0x1   :  { %9 = vsyncpa [#allocation4], 0  ;;  %s14_s14 = sshll.u32 %s661_s0, 4  ;;  %s491_s15 = smov [#allocation2]   ;;  %s15_s14 = int_to_ptr.hbm [resolvable:$true] %s14_s14 }
   0x2   :  { %s16_s16 = sshll.u32 %s491_s15, 4  ;;  %s492_s17 = smov 256   ;;  %s17_s16 = int_to_ptr.vmem [resolvable:$true] %s16_s16 }
   0x3   :  { %s493_s18 = smov 16  }
   0x4   :  { %22 = dma.hbm_to_vmem [thread:$0]  %s15_s14, 2048, %s17_s16, [#allocation3], %s492_s17, %s492_s17, %s493_s18  }
   0x5   :  { %487 = dma.done.wait [#allocation3], 2048  }
   0x6   :  { %488 = vsyncadd [#allocation3], 4294965248  ;;  %v521_v0 = vld [vmem:[#allocation2 + $0x40] sm:$0xff]  ;;  %v523_v1 = vld [vmem:[#allocation2 + $0x48] sm:$0xff]  ;;  %vm140_vm0 = vcmask 261120   ;;  %v116_v36 = vlaneseq  ;;  %vm121_vm1 = vcmask 130112  }
   0x7   :  { %v525_v2 = vld [vmem:[#allocation2] sm:$0xff]  ;;  %v59_v3 = vadd.f32 %v523_v1, %v521_v0  ;;  %v529_v4 = vld [vmem:[#allocation2 + $0x8] sm:$0xff]  ;;  %v539_v9 = vld [vmem:[#allocation2 + $0x50] sm:$0xff]  ;;  %v83_v25 = vmax.f32 %v521_v0, %v523_v1  ;;  %vm213_vm2 = vcmask 15360   ;;  %vm125_vm3 = vcmask 195712   ;;  %s395_s30 = sshll.u32 %s664_s3, 4  ;;  %s396_s30 = int_to_ptr.hbm [resolvable:$true] %s395_s30 }
   0x8   :  { %v531_v5 = vld [vmem:[#allocation2 + $0x20] sm:$0xff]  ;;  %v533_v6 = vld [vmem:[#allocation2 + $0x28] sm:$0xff]  ;;  %v47_v7 = vadd.f32 %v529_v4, %v525_v2  ;;  %v541_v10 = vld [vmem:[#allocation2 + $0x58] sm:$0xff]  ;;  %v71_v24 = vmax.f32 %v525_v2, %v529_v4  ;;  %v591_v37 = vand.u32 127, %v116_v36  ;;  %vm129_vm4 = vcmask 261312  }
   0x9   :  { %v53_v8 = vadd.f32 %v533_v6, %v531_v5  ;;  %60 = vadd.xlane.f32.xlu1 %v59_v3  ;;  %v543_v11 = vld [vmem:[#allocation2 + $0x10] sm:$0xff]  ;;  %v545_v12 = vld [vmem:[#allocation2 + $0x18] sm:$0xff]  ;;  %v547_v13 = vld [vmem:[#allocation2 + $0x60] sm:$0xff]  ;;  %v62_v15 = vadd.f32 %v541_v10, %v539_v9  ;;  %v86_v27 = vmax.f32 %v539_v9, %v541_v10  ;;  %v77_v29 = vmax.f32 %v531_v5, %v533_v6 }
   0xa   :  { %48 = vadd.xlane.f32.xlu0 %v47_v7  ;;  %v549_v14 = vld [vmem:[#allocation2 + $0x68] sm:$0xff]  ;;  %v50_v16 = vadd.f32 %v545_v12, %v543_v11  ;;  %v557_v18 = vld [vmem:[#allocation2 + $0x70] sm:$0xff]  ;;  %v559_v19 = vld [vmem:[#allocation2 + $0x78] sm:$0xff]  ;;  %v74_v26 = vmax.f32 %v543_v11, %v545_v12  ;;  %v119_v40 = vadd.s32 4294967288, %v591_v37  ;;  %v123_v46 = vadd.s32 4294967280, %v591_v37 }
   0xb   :  { %54 = vadd.xlane.f32.xlu2 %v53_v8  ;;  %v65_v17 = vadd.f32 %v549_v14, %v547_v13  ;;  %v561_v20 = vld [vmem:[#allocation2 + $0x30] sm:$0xff]  ;;  %v563_v21 = vld [vmem:[#allocation2 + $0x38] sm:$0xff]  ;;  %v68_v22 = vadd.f32 %v559_v19, %v557_v18  ;;  %v89_v28 = vmax.f32 %v547_v13, %v549_v14  ;;  %v92_v31 = vmax.f32 %v557_v18, %v559_v19  ;;  %v103_v32 = vld [vmem:[%s662_s1] sm:$0x3] }
   0xc   :  { %v56_v23 = vadd.f32 %v563_v21, %v561_v20  ;;  %v80_v30 = vmax.f32 %v561_v20, %v563_v21  ;;  %408 = vmatpush.xpose.msk.msra.mxu0 %vm140_vm0, %v103_v32  ;;  %410 = vmatpush.xpose.msk.msra.mxu1 %vm140_vm0, %v103_v32  ;;  %v107_v52 = vld [vmem:[%s663_s2 + $0x18] sm:$0xff]  ;;  %v127_v53 = vadd.s32 4294967272, %v591_v37  ;;  %v106_v57 = vld [vmem:[%s663_s2 + $0x10] sm:$0xff]  ;;  %vm138_vm5 = vcmask 1041409  }
   0xd   :  { %417 = vmatpush.xpose.msk.msra.mxu3 %vm213_vm2, %v107_v52  ;;  %412 = vmatpush.xpose.msk.msra.mxu2 %vm213_vm2, %v107_v52 }
  0x11   :  { %63 = vadd.xlane.f32.xlu1 %v62_v15  ;;  %418 = vmatpush.xpose.msk.msra.mxu3 %vm213_vm2, %v106_v57 }
  0x12   :  { %51 = vadd.xlane.f32.xlu0 %v50_v16  ;;  %413 = vmatpush.xpose.msk.msra.mxu2 %vm213_vm2, %v106_v57  ;;  %v105_v16 = vld [vmem:[%s663_s2 + $0x8] sm:$0xff] }
  0x13   :  { %66 = vadd.xlane.f32.xlu2 %v65_v17 }
  0x15   :  { %419 = vmatpush.xpose.msk.msra.mxu3 %vm213_vm2, %v105_v16 }
  0x16   :  { %414 = vmatpush.xpose.msk.msra.mxu2 %vm213_vm2, %v105_v16 }
  0x19   :  { %69 = vadd.xlane.f32.xlu1 %v68_v22 }
  0x1a   :  { %57 = vadd.xlane.f32.xlu0 %v56_v23 }
  0x1b   :  { %72 = vmax.xlane.f32.xlu2 %v71_v24 }
  0x21   :  { %84 = vmax.xlane.f32.xlu1 %v83_v25 }
  0x22   :  { %75 = vmax.xlane.f32.xlu0 %v74_v26 }
  0x23   :  { %87 = vmax.xlane.f32.xlu2 %v86_v27 }
  0x29   :  { %90 = vmax.xlane.f32.xlu1 %v89_v28 }
  0x2a   :  { %78 = vmax.xlane.f32.xlu0 %v77_v29 }
  0x2b   :  { %81 = vmax.xlane.f32.xlu2 %v80_v30 }
  0x32   :  { %93 = vmax.xlane.f32.xlu0 %v92_v31 }
  0x7c   :  { %v61_v33 = vpop.xlane.xlu1 %60 }
  0x7d   :  { %v49_v34 = vpop.xlane.xlu0 %48  ;;  %v99_v39 = vmul.f32 0.00390625, %v61_v33 }
  0x7e   :  { %v55_v35 = vpop.xlane.xlu2 %54  ;;  %v95_v45 = vmul.f32 0.00390625, %v49_v34 }
  0x7f   :  { %v131_v48 = vperm.slane %v99_v39, %v591_v37  ;;  %v97_v49 = vmul.f32 0.00390625, %v55_v35 }
  0x80   :  { %v118_v54 = vperm.slane %v95_v45, %v591_v37 }
  0x81   :  { %v124_v58 = vperm.slane %v97_v49, %v123_v46 }
  0x84   :  { %v64_v38 = vpop.xlane.xlu1 %63 }
  0x85   :  { %v100_v41 = vmul.f32 0.00390625, %v64_v38  ;;  %v52_v42 = vpop.xlane.xlu0 %51 }
  0x86   :  { %v67_v43 = vpop.xlane.xlu2 %66  ;;  %v96_v44 = vmul.f32 0.00390625, %v52_v42 }
  0x87   :  { %v101_v47 = vmul.f32 0.00390625, %v67_v43  ;;  %v132_v50 = vperm.slane %v100_v41, %v119_v40 }
  0x88   :  { %v120_v51 = vperm.slane %v96_v44, %v119_v40 }
  0x89   :  { %v134_v55 = vperm.slane %v101_v47, %v123_v46  ;;  %v133_v59 = vsel %vm121_vm1, %v132_v50, %v131_v48 }
  0x8a   :  { %v122_v63 = vsel %vm121_vm1, %v120_v51, %v118_v54 }
  0x8b   :  { %v135_v15 = vsel %vm125_vm3, %v134_v55, %v133_v59  ;;  %v126_v17 = vsel %vm125_vm3, %v124_v58, %v122_v63 }
  0x8c   :  { %v70_v56 = vpop.xlane.xlu1 %69 }
  0x8d   :  { %v102_v60 = vmul.f32 0.00390625, %v70_v56  ;;  %v58_v61 = vpop.xlane.xlu0 %57 }
  0x8e   :  { %v73_v62 = vpop.xlane.xlu2 %72  ;;  %v98_v3 = vmul.f32 0.00390625, %v58_v61 }
  0x8f   :  { %v136_v7 = vperm.slane %v102_v60, %v127_v53  ;;  %v175_v29 = vperm.slane %v73_v62, %v591_v37 }
  0x90   :  { %v128_v8 = vperm.slane %v98_v3, %v127_v53 }
  0x91   :  { %v137_v22 = vsel %vm129_vm4, %v136_v7, %v135_v15 }
  0x92   :  { %v130_v23 = vsel %vm129_vm4, %v128_v8, %v126_v17 }
  0x93   :  { %v139_v24 = vsel %vm138_vm5, %v137_v22, %v130_v23 }
  0x94   :  { %409 = vmatmul.msk.f32.vlgmr.msra.gmra.mxu0 %vm140_vm0, %v139_v24  ;;  %v85_v26 = vpop.xlane.xlu1 %84 }
  0x95   :  { %v76_v25 = vpop.xlane.xlu0 %75  ;;  %v182_v30 = vperm.slane %v85_v26, %v591_v37 }
  0x96   :  { %v88_v27 = vpop.xlane.xlu2 %87  ;;  %v176_v31 = vperm.slane %v76_v25, %v119_v40 }
  0x97   :  { %v183_v32 = vperm.slane %v88_v27, %v119_v40 }
  0x98   :  { %v177_v39 = vsel %vm121_vm1, %v176_v31, %v175_v29 }
  0x99   :  { %v184_v41 = vsel %vm121_vm1, %v183_v32, %v182_v30 }
  0x9c   :  { %v91_v33 = vpop.xlane.xlu1 %90 }
  0x9d   :  { %v79_v28 = vpop.xlane.xlu0 %78  ;;  %v185_v38 = vperm.slane %v91_v33, %v123_v46 }
  0x9e   :  { %v178_v34 = vperm.slane %v79_v28, %v123_v46  ;;  %v82_v35 = vpop.xlane.xlu2 %81  ;;  %v104_v46 = vld [vmem:[%s663_s2] sm:$0xff]  ;;  %s494_s2 = smov [#allocation5]  }
  0x9f   :  { %v180_v42 = vperm.slane %v82_v35, %v127_v53  ;;  %v186_v47 = vsel %vm125_vm3, %v185_v38, %v184_v41  ;;  %420 = vmatpush.xpose.msk.msra.mxu3 %vm213_vm2, %v104_v46  ;;  %415 = vmatpush.xpose.msk.msra.mxu2 %vm213_vm2, %v104_v46  ;;  %s393_s27 = sshll.u32 %s494_s2, 4  ;;  %s394_s27 = int_to_ptr.vmem [resolvable:$true] %s393_s27 }
  0xa0   :  { %v179_v43 = vsel %vm125_vm3, %v178_v34, %v177_v39 }
  0xa1   :  { %v181_v48 = vsel %vm129_vm4, %v180_v42, %v179_v43 }
  0xa5   :  { %v94_v44 = vpop.xlane.xlu0 %93 }
  0xa6   :  { %v187_v45 = vperm.slane %v94_v44, %v127_v53  ;;  %v293_v53 = vshrl.u32 %v116_v36, 7 }
  0xa8   :  { %v188_v37 = vsel %vm129_vm4, %v187_v45, %v186_v47  ;;  %427 = vset.pattern.permute.xlu1 %v293_v53  ;;  %v306_v54 = vadd.s32 16, %v293_v53  ;;  %v300_v55 = vadd.s32 8, %v293_v53  ;;  %v312_v24 = vadd.s32 24, %v293_v53 }
  0xa9   :  { %v189_v40 = vsel %vm138_vm5, %v188_v37, %v181_v48 }
  0xaa   :  { %411 = vmatmul.msk.f32.vlgmr.msra.gmra.mxu1 %vm140_vm0, %v189_v40  ;;  %429 = vset.pattern.permute.xlu0 %v306_v54 }
  0xab   :  { %428 = vset.pattern.permute.xlu2 %v300_v55 }
 0x111   :  { %v163_v49 = vpop.f32.mrf.mxu0 }
 0x112   :  { %v166_v50 = vmax.f32 %v163_v49, 0.0 }
 0x114   :  { %421 = vmatmul.msk.f32.vlgmr.msra.gmra.mxu3 %vm213_vm2, %v166_v50 }
 0x127   :  { %v209_v51 = vpop.f32.mrf.mxu1 }
 0x128   :  { %v212_v52 = vmax.f32 %v209_v51, 0.0 }
 0x12a   :  { %416 = vmatmul.msk.f32.vlgmr.msra.gmra.mxu2 %vm213_vm2, %v212_v52 }
 0x197   :  { %v269_v56 = vpop.f32.mrf.mxu3 }
 0x1ad   :  { %v246_v57 = vpop.f32.mrf.mxu2 }
 0x1ae   :  { %v270_v58 = vadd.f32 %v269_v56, %v246_v57 }
 0x1b0   :  { %v422_v59 = vmul.f32 -1.442695, %v270_v58 }
 0x1b2   :  { %435 = vpow2.f32 %v422_v59 }
 0x1b8   :  { %v436_v60 = vpop.eup %435 }
 0x1b9   :  { %v275_v61 = vadd.f32 1.0, %v436_v60 }
 0x1bb   :  { %437 = vrcp.f32 %v275_v61  ;;  %v287_v7 = vand.u32 2147483648, %v275_v61  ;;  %v285_v36 = vand.u32 2147483647, %v275_v61  ;;  %vm281_vm7 = vweird.f32 %v275_v61 }
 0x1bd   :  { %v288_v16 = vor.u32 1.1754944e-38, %v287_v7  ;;  %vm286_vm9 = vcmp.eq.f32.partialorder %v285_v36, 8.507059e+37 }
 0x1c1   :  { %v438_v62 = vpop.eup %437 }
 0x1c2   :  { %v277_v63 = vmul.f32 %v438_v62, %v275_v61  ;;  %vm282_vm6 = vweird.f32 %v438_v62 }
 0x1c3   :  { %vm283_vm8 = vmor %vm281_vm7, %vm282_vm6 }
 0x1c4   :  { %v278_v3 = vsub.f32 1.0, %v277_v63 }
 0x1c6   :  { %v279_v8 = vmul.f32 %v438_v62, %v278_v3 }
 0x1c8   :  { %v280_v15 = vadd.f32 %v438_v62, %v279_v8 }
 0x1ca   :  { %v284_v17 = vsel %vm283_vm8, %v438_v62, %v280_v15 }
 0x1cb   :  { %v289_v22 = vsel %vm286_vm9, %v288_v16, %v284_v17 }
 0x1cc   :  { %v291_v23 = vperm.slane %v289_v22, 0  ;;  %v316_v25 = vperm.slane %v289_v22, 1 }
 0x1ce   :  { %308 = vperm.xlu0 %429, %v291_v23   ;;  %302 = vperm.xlu2 %428, %v291_v23  }
 0x1cf   :  { %296 = vperm.xlu1 %427, %v291_v23  }
 0x1d6   :  { %430 = vset.pattern.permute.xlu2 %v312_v24  ;;  %434 = vset.pattern.permute.xlu0 %v312_v24 }
 0x1d7   :  { %321 = vperm.xlu1 %427, %v316_v25  }
 0x1de   :  { %314 = vperm.xlu2 %430, %v291_v23  }
 0x1df   :  { %432 = vset.pattern.permute.xlu1 %v306_v54 }
 0x1e6   :  { %431 = vset.pattern.permute.xlu2 %v300_v55 }
 0x1e7   :  { %333 = vperm.xlu1 %432, %v316_v25  }
 0x1ee   :  { %327 = vperm.xlu2 %431, %v316_v25  }
 0x1f6   :  { %433 = vset.pattern.permute.xlu2 %v312_v24 }
 0x1fe   :  { %339 = vperm.xlu2 %433, %v316_v25  }
 0x228   :  { %v303_v26 = vpop.permute.xlu2 %302 }
 0x229   :  { %v343_v27 = vmul.f32 %v303_v26, %v543_v11  ;;  %v344_v28 = vmul.f32 %v303_v26, %v545_v12 }
 0x22b   :  { %v359_v29 = vmax.f32 %v343_v27, 0.0  ;;  %v360_v30 = vmax.f32 %v344_v28, 0.0 }
 0x22d   :  { %375 = vst [vmem:[#allocation5 + $0x10] sm:$0xff] %v359_v29 }
 0x22e   :  { %376 = vst [vmem:[#allocation5 + $0x18] sm:$0xff] %v360_v30 }
 0x238   :  { %v315_v31 = vpop.permute.xlu2 %314 }
 0x239   :  { %v347_v32 = vmul.f32 %v315_v31, %v561_v20  ;;  %v348_v33 = vmul.f32 %v315_v31, %v563_v21 }
 0x23b   :  { %v363_v34 = vmax.f32 %v347_v32, 0.0  ;;  %v364_v35 = vmax.f32 %v348_v33, 0.0 }
 0x23d   :  { %379 = vst [vmem:[#allocation5 + $0x30] sm:$0xff] %v363_v34 }
 0x23e   :  { %380 = vst [vmem:[#allocation5 + $0x38] sm:$0xff] %v364_v35 }
 0x240   :  { %v309_v38 = vpop.permute.xlu0 %308 }
 0x241   :  { %v345_v39 = vmul.f32 %v309_v38, %v531_v5  ;;  %v346_v11 = vmul.f32 %v309_v38, %v533_v6  ;;  %v297_v41 = vpop.permute.xlu1 %296 }
 0x242   :  { %v341_v12 = vmul.f32 %v297_v41, %v525_v2  ;;  %v342_v42 = vmul.f32 %v297_v41, %v529_v4 }
 0x243   :  { %v361_v43 = vmax.f32 %v345_v39, 0.0  ;;  %v362_v44 = vmax.f32 %v346_v11, 0.0 }
 0x244   :  { %v357_v45 = vmax.f32 %v341_v12, 0.0  ;;  %v358_v20 = vmax.f32 %v342_v42, 0.0 }
 0x245   :  { %377 = vst [vmem:[#allocation5 + $0x20] sm:$0xff] %v361_v43 }
 0x246   :  { %378 = vst [vmem:[#allocation5 + $0x28] sm:$0xff] %v362_v44 }
 0x247   :  { %373 = vst [vmem:[#allocation5] sm:$0xff] %v357_v45 }
 0x248   :  { %374 = vst [vmem:[#allocation5 + $0x8] sm:$0xff] %v358_v20  ;;  %v328_v21 = vpop.permute.xlu2 %327 }
 0x249   :  { %v351_v47 = vmul.f32 %v328_v21, %v539_v9  ;;  %v352_v5 = vmul.f32 %v328_v21, %v541_v10  ;;  %v322_v48 = vpop.permute.xlu1 %321 }
 0x24a   :  { %v349_v6 = vmul.f32 %v322_v48, %v521_v0  ;;  %v350_v2 = vmul.f32 %v322_v48, %v523_v1 }
 0x24b   :  { %v367_v37 = vmax.f32 %v351_v47, 0.0  ;;  %v368_v4 = vmax.f32 %v352_v5, 0.0 }
 0x24c   :  { %v365_v40 = vmax.f32 %v349_v6, 0.0  ;;  %v366_v46 = vmax.f32 %v350_v2, 0.0 }
 0x24d   :  { %383 = vst [vmem:[#allocation5 + $0x50] sm:$0xff] %v367_v37 }
 0x24e   :  { %384 = vst [vmem:[#allocation5 + $0x58] sm:$0xff] %v368_v4 }
 0x24f   :  { %381 = vst [vmem:[#allocation5 + $0x40] sm:$0xff] %v365_v40 }
 0x250   :  { %382 = vst [vmem:[#allocation5 + $0x48] sm:$0xff] %v366_v46 }
 0x258   :  { %v340_v49 = vpop.permute.xlu2 %339 }
 0x259   :  { %v355_v50 = vmul.f32 %v340_v49, %v557_v18  ;;  %v356_v9 = vmul.f32 %v340_v49, %v559_v19  ;;  %v334_v51 = vpop.permute.xlu1 %333 }
 0x25a   :  { %v353_v10 = vmul.f32 %v334_v51, %v547_v13  ;;  %v354_v0 = vmul.f32 %v334_v51, %v549_v14 }
 0x25b   :  { %v371_v52 = vmax.f32 %v355_v50, 0.0  ;;  %v372_v1 = vmax.f32 %v356_v9, 0.0 }
 0x25c   :  { %v369_v53 = vmax.f32 %v353_v10, 0.0  ;;  %v370_v54 = vmax.f32 %v354_v0, 0.0 }
 0x25d   :  { %387 = vst [vmem:[#allocation5 + $0x70] sm:$0xff] %v371_v52 }
 0x25e   :  { %388 = vst [vmem:[#allocation5 + $0x78] sm:$0xff] %v372_v1 }
 0x25f   :  { %385 = vst [vmem:[#allocation5 + $0x60] sm:$0xff] %v369_v53 }
 0x260   :  { %386 = vst [vmem:[#allocation5 + $0x68] sm:$0xff] %v370_v54 }
 0x261   :  { %401 = dma.vmem_to_hbm [thread:$0]  %s394_s27, 2048, %s396_s30, [#allocation4], %s492_s17, %s492_s17, %s493_s18  }
 0x262   :  { %489 = dma.done.wait [#allocation4], 2048  }
 0x263   :  { %490 = vsyncadd [#allocation4], 4294965248 }
 0x264   :  { %406 = vsyncpa [#allocation3], 1 }
 0x265   :  { %407 = vsyncpa [#allocation4], 1 }

</bundles_post_ra>
